<compile_context>
chip_gen: v7x
topology: tpu7x:2x2x1
jax: 0.10.0
libtpu: 0.0.40
codegen_flags: <defaults>
</compile_context>

<pallas_src>
import jax
import jax.numpy as jnp
from jax.experimental import pallas as pl
from jax.experimental.pallas import tpu as pltpu

LATENT_DIM = 20
CONDITION_DIM = 10
HIDDEN_DIM = 400
OUTPUT_DIM = 784
OUTPUT_PAD = ((OUTPUT_DIM + 127) // 128) * 128   # 896 = 7 * 128 (lane-dense)
MAX_BATCH_TILE = 256                              # rows per grid step


def _decoder_kernel(z_ref, c_ref, w1z_ref, w1c_ref, b1_ref, w2_ref, b2_ref,
                    out_ref):
    # fc1, split into z / c halves (== concat then matmul), f32 accumulation.
    zb = z_ref[...].astype(jnp.bfloat16)
    cb = c_ref[...].astype(jnp.bfloat16)
    h = jnp.dot(zb, w1z_ref[...], preferred_element_type=jnp.float32)
    h = h + jnp.dot(cb, w1c_ref[...], preferred_element_type=jnp.float32)
    h = jnp.maximum(h + b1_ref[...], 0.0)                       # bias + ReLU
    # fc2 + bias + sigmoid (exp and approx reciprocal run on the EUP slot).
    o = jnp.dot(h.astype(jnp.bfloat16), w2_ref[...],
                preferred_element_type=jnp.float32)
    o = o + b2_ref[...]
    out_ref[...] = pl.reciprocal(1.0 + jnp.exp(-o),
                                 approx=True).astype(out_ref.dtype)


def prepare_params(w1, b1, w2, b2):
    """One-time parameter prep (do NOT call per forward pass):
       - split fc1 weight into z-rows / c-rows (moves the concat into math),
       - cast weights to bf16 (halves HBM traffic, native MXU rate),
       - pad fc2 output dim 784 -> 896 so stores are lane-dense.
       Weights are (in_features, out_features), i.e. transposed nn.Linear."""
    w1 = jnp.asarray(w1)
    w1z = w1[:LATENT_DIM, :].astype(jnp.bfloat16)               # (20, 400)
    w1c = w1[LATENT_DIM:, :].astype(jnp.bfloat16)               # (10, 400)
    b1r = jnp.asarray(b1, jnp.float32).reshape(1, HIDDEN_DIM)   # (1, 400)
    w2p = jnp.zeros((HIDDEN_DIM, OUTPUT_PAD), jnp.bfloat16)
    w2p = w2p.at[:, :OUTPUT_DIM].set(jnp.asarray(w2).astype(jnp.bfloat16))
    b2p = jnp.zeros((1, OUTPUT_PAD), jnp.float32)
    b2p = b2p.at[:, :OUTPUT_DIM].set(
        jnp.asarray(b2, jnp.float32).reshape(1, OUTPUT_DIM))
    return w1z, w1c, b1r, w2p, b2p


def decoder_forward(z, c, params):
    """z: (B, 20), c: (B, 10), params from prepare_params. Returns (B, 784)."""
    w1z, w1c, b1r, w2p, b2p = params
    z = z.astype(jnp.float32)
    c = c.astype(jnp.float32)
    B = z.shape[0]
    tb = B if B <= MAX_BATCH_TILE else MAX_BATCH_TILE
    grid = (pl.cdiv(B, tb),)

    row_spec = lambda feat: pl.BlockSpec((tb, feat), lambda i: (i, 0))
    const_spec = lambda shape: pl.BlockSpec(shape, lambda i: (0, 0))

    out_padded = pl.pallas_call(
        _decoder_kernel,
        out_shape=jax.ShapeDtypeStruct((B, OUTPUT_PAD), jnp.float32),
        grid=grid,
        in_specs=[
            row_spec(LATENT_DIM),          # z   (tb, 20)
            row_spec(CONDITION_DIM),       # c   (tb, 10)
            const_spec(w1z.shape),         # w1z (20, 400)  resident
            const_spec(w1c.shape),         # w1c (10, 400)  resident
            const_spec(b1r.shape),         # b1  (1, 400)   resident
            const_spec(w2p.shape),         # w2  (400, 896) resident
            const_spec(b2p.shape),         # b2  (1, 896)   resident
        ],
        out_specs=row_spec(OUTPUT_PAD),    # (tb, 896) lane-dense stores
        compiler_params=pltpu.CompilerParams(
            dimension_semantics=("parallel",)),
    )(z, c, w1z, w1c, b1r, w2p, b2p)
    return out_padded[:, :OUTPUT_DIM]


def init_params(key):
    """Deterministic init matching nn.Linear shapes (weights stored transposed)."""
    k1, k2, k3, k4 = jax.random.split(key, 4)
    in1 = LATENT_DIM + CONDITION_DIM
    lim1 = 1.0 / jnp.sqrt(in1)
    lim2 = 1.0 / jnp.sqrt(HIDDEN_DIM)
    w1 = jax.random.uniform(k1, (in1, HIDDEN_DIM), jnp.float32, -lim1, lim1)
    b1 = jax.random.uniform(k2, (HIDDEN_DIM,), jnp.float32, -lim1, lim1)
    w2 = jax.random.uniform(k3, (HIDDEN_DIM, OUTPUT_DIM), jnp.float32, -lim2, lim2)
    b2 = jax.random.uniform(k4, (OUTPUT_DIM,), jnp.float32, -lim2, lim2)
    return w1, b1, w2, b2


if __name__ == "__main__":
    key = jax.random.PRNGKey(0)
    kp, kz, kc = jax.random.split(key, 3)
    w1, b1, w2, b2 = init_params(kp)
    params = prepare_params(w1, b1, w2, b2)   # one-time: bf16 cast, pad, split

    B = 8
    z = jax.random.normal(kz, (B, LATENT_DIM), jnp.float32)
    c = jax.nn.one_hot(
        jax.random.randint(kc, (B,), 0, CONDITION_DIM), CONDITION_DIM
    ).astype(jnp.float32)

    out = decoder_forward(z, c, params)
    out = jax.block_until_ready(out)
    assert out.shape == (B, OUTPUT_DIM)

    # Reference with matching bf16 weight/activation quantization + f32 accum.
    zc = jnp.concatenate([z, c], axis=1)
    h_ref = jnp.maximum(
        jnp.dot(zc.astype(jnp.bfloat16), w1.astype(jnp.bfloat16),
                preferred_element_type=jnp.float32) + b1, 0.0)
    x_ref = jax.nn.sigmoid(
        jnp.dot(h_ref.astype(jnp.bfloat16), w2.astype(jnp.bfloat16),
                preferred_element_type=jnp.float32) + b2)
    assert jnp.allclose(out, x_ref, atol=1e-2, rtol=0.0), float(
        jnp.max(jnp.abs(out - x_ref)))

    # Sanity vs. the full-f32 reference (looser tolerance: bf16 weights).
    x_f32 = jax.nn.sigmoid(jnp.maximum(zc @ w1 + b1, 0.0) @ w2 + b2)
    assert jnp.allclose(out, x_f32, atol=5e-2), float(
        jnp.max(jnp.abs(out - x_f32)))

    print("KERNEL_OK")
</pallas_src>

<mosaic_0001>
module attributes {stable_mosaic.version = 11 : i64} {
  func.func @_decoder_kernel(%arg0: i32, %arg1: memref<8x20xf32, #tpu.memory_space<vmem>>, %arg2: memref<8x10xf32, #tpu.memory_space<vmem>>, %arg3: memref<20x400xbf16, #tpu.memory_space<vmem>>, %arg4: memref<10x400xbf16, #tpu.memory_space<vmem>>, %arg5: memref<1x400xf32, #tpu.memory_space<vmem>>, %arg6: memref<400x896xbf16, #tpu.memory_space<vmem>>, %arg7: memref<1x896xf32, #tpu.memory_space<vmem>>, %arg8: memref<8x896xf32, #tpu.memory_space<vmem>>) attributes {dimension_semantics = [#tpu.dimension_semantics<parallel>], iteration_bounds = array<i64: 1>, scalar_prefetch = 0 : i64, scratch_operands = 0 : i64, tpu.core_type = #tpu.core_type<tc>, window_params = [{transform_indices = @transform_0, window_bounds = array<i64: 8, 20>}, {transform_indices = @transform_1, window_bounds = array<i64: 8, 10>}, {pipeline_mode = #tpu.pipeline_mode<synchronous>, transform_indices = @transform_2, window_bounds = array<i64: 20, 400>}, {pipeline_mode = #tpu.pipeline_mode<synchronous>, transform_indices = @transform_3, window_bounds = array<i64: 10, 400>}, {pipeline_mode = #tpu.pipeline_mode<synchronous>, transform_indices = @transform_4, window_bounds = array<i64: 1, 400>}, {pipeline_mode = #tpu.pipeline_mode<synchronous>, transform_indices = @transform_5, window_bounds = array<i64: 400, 896>}, {pipeline_mode = #tpu.pipeline_mode<synchronous>, transform_indices = @transform_6, window_bounds = array<i64: 1, 896>}, {transform_indices = @transform_7, window_bounds = array<i64: 8, 896>}]} {
    %c0 = arith.constant 0 : index
    %c0_0 = arith.constant 0 : index
    %0 = vector.load %arg1[%c0, %c0_0] : memref<8x20xf32, #tpu.memory_space<vmem>>, vector<8x20xf32>
    %1 = arith.truncf %0 : vector<8x20xf32> to vector<8x20xbf16>
    %c0_1 = arith.constant 0 : index
    %c0_2 = arith.constant 0 : index
    %2 = vector.load %arg2[%c0_1, %c0_2] : memref<8x10xf32, #tpu.memory_space<vmem>>, vector<8x10xf32>
    %3 = arith.truncf %2 : vector<8x10xf32> to vector<8x10xbf16>
    %c0_3 = arith.constant 0 : index
    %c0_4 = arith.constant 0 : index
    %4 = vector.load %arg3[%c0_3, %c0_4] : memref<20x400xbf16, #tpu.memory_space<vmem>>, vector<20x400xbf16>
    %cst = arith.constant dense<0.000000e+00> : vector<8x400xf32>
    %5 = tpu.matmul %1, %4, %cst {dimension_numbers = #tpu.dot_dimension_numbers<[1], [0], [0], [1], [0, 0, 1, 1], [], []>} : vector<8x20xbf16>, vector<20x400xbf16>, vector<8x400xf32> -> vector<8x400xf32>
    %c0_5 = arith.constant 0 : index
    %c0_6 = arith.constant 0 : index
    %6 = vector.load %arg4[%c0_5, %c0_6] : memref<10x400xbf16, #tpu.memory_space<vmem>>, vector<10x400xbf16>
    %cst_7 = arith.constant dense<0.000000e+00> : vector<8x400xf32>
    %7 = tpu.matmul %3, %6, %cst_7 {dimension_numbers = #tpu.dot_dimension_numbers<[1], [0], [0], [1], [0, 0, 1, 1], [], []>} : vector<8x10xbf16>, vector<10x400xbf16>, vector<8x400xf32> -> vector<8x400xf32>
    %8 = arith.addf %5, %7 : vector<8x400xf32>
    %c0_8 = arith.constant 0 : index
    %c0_9 = arith.constant 0 : index
    %9 = vector.load %arg5[%c0_8, %c0_9] : memref<1x400xf32, #tpu.memory_space<vmem>>, vector<1x400xf32>
    %10 = vector.broadcast %9 : vector<1x400xf32> to vector<8x400xf32>
    %11 = arith.addf %8, %10 : vector<8x400xf32>
    %cst_10 = arith.constant 0.000000e+00 : f32
    %12 = vector.broadcast %cst_10 : f32 to vector<8x400xf32>
    %13 = arith.maximumf %11, %12 : vector<8x400xf32>
    %14 = arith.truncf %13 : vector<8x400xf32> to vector<8x400xbf16>
    %c0_11 = arith.constant 0 : index
    %c0_12 = arith.constant 0 : index
    %15 = vector.load %arg6[%c0_11, %c0_12] : memref<400x896xbf16, #tpu.memory_space<vmem>>, vector<400x896xbf16>
    %cst_13 = arith.constant dense<0.000000e+00> : vector<8x896xf32>
    %16 = tpu.matmul %14, %15, %cst_13 {dimension_numbers = #tpu.dot_dimension_numbers<[1], [0], [0], [1], [0, 0, 1, 1], [], []>} : vector<8x400xbf16>, vector<400x896xbf16>, vector<8x896xf32> -> vector<8x896xf32>
    %c0_14 = arith.constant 0 : index
    %c0_15 = arith.constant 0 : index
    %17 = vector.load %arg7[%c0_14, %c0_15] : memref<1x896xf32, #tpu.memory_space<vmem>>, vector<1x896xf32>
    %18 = vector.broadcast %17 : vector<1x896xf32> to vector<8x896xf32>
    %19 = arith.addf %16, %18 : vector<8x896xf32>
    %cst_16 = arith.constant 0.000000e+00 : f32
    %20 = vector.broadcast %cst_16 : f32 to vector<8x896xf32>
    %21 = arith.subf %20, %19 : vector<8x896xf32>
    %22 = math.exp %21 : vector<8x896xf32>
    %cst_17 = arith.constant 1.000000e+00 : f32
    %23 = vector.broadcast %cst_17 : f32 to vector<8x896xf32>
    %24 = arith.addf %23, %22 : vector<8x896xf32>
    %25 = tpu.reciprocal %24 {approx = true} : vector<8x896xf32> -> vector<8x896xf32>
    %c0_18 = arith.constant 0 : index
    %c0_19 = arith.constant 0 : index
    %26 = vector.load %arg8[%c0_18, %c0_19] : memref<8x896xf32, #tpu.memory_space<vmem>>, vector<8x896xf32>
    tpu.vector_store %arg8[%c0_18, %c0_19], %25 {strides = array<i32>} : memref<8x896xf32, #tpu.memory_space<vmem>>, vector<8x896xf32>,
    return
  }
  func.func @transform_0(%arg0: i32) -> (i32, i32) {
    %c0_i32 = arith.constant 0 : i32
    %c0_i32_0 = arith.constant 0 : i32
    return %arg0, %c0_i32 : i32, i32
  }
  func.func @transform_1(%arg0: i32) -> (i32, i32) {
    %c0_i32 = arith.constant 0 : i32
    %c0_i32_0 = arith.constant 0 : i32
    return %arg0, %c0_i32 : i32, i32
  }
  func.func @transform_2(%arg0: i32) -> (i32, i32) {
    %c0_i32 = arith.constant 0 : i32
    %c0_i32_0 = arith.constant 0 : i32
    %c0_i32_1 = arith.constant 0 : i32
    return %c0_i32, %c0_i32_0 : i32, i32
  }
  func.func @transform_3(%arg0: i32) -> (i32, i32) {
    %c0_i32 = arith.constant 0 : i32
    %c0_i32_0 = arith.constant 0 : i32
    %c0_i32_1 = arith.constant 0 : i32
    return %c0_i32, %c0_i32_0 : i32, i32
  }
  func.func @transform_4(%arg0: i32) -> (i32, i32) {
    %c0_i32 = arith.constant 0 : i32
    %c0_i32_0 = arith.constant 0 : i32
    %c0_i32_1 = arith.constant 0 : i32
    return %c0_i32, %c0_i32_0 : i32, i32
  }
  func.func @transform_5(%arg0: i32) -> (i32, i32) {
    %c0_i32 = arith.constant 0 : i32
    %c0_i32_0 = arith.constant 0 : i32
    %c0_i32_1 = arith.constant 0 : i32
    return %c0_i32, %c0_i32_0 : i32, i32
  }
  func.func @transform_6(%arg0: i32) -> (i32, i32) {
    %c0_i32 = arith.constant 0 : i32
    %c0_i32_0 = arith.constant 0 : i32
    %c0_i32_1 = arith.constant 0 : i32
    return %c0_i32, %c0_i32_0 : i32, i32
  }
  func.func @transform_7(%arg0: i32) -> (i32, i32) {
    %c0_i32 = arith.constant 0 : i32
    %c0_i32_0 = arith.constant 0 : i32
    return %arg0, %c0_i32 : i32, i32
  }
}

</mosaic_0001>

<bundles_post_ra>
// kernel: tpu_custom_call.1
= control target key start
LH: loop header
LB: loop body
LE: loop exit
PB: predicated region body
PF: predicated region fallthrough
CT: control target
= control target key end

     0   :  { %12 = vsyncpa [#allocation3], 0  ;;  %s2821_s0 = inlined_call_operand.hbm [shape: f32[8,20], index: 0, kind: input, shape index: {}]   ;;  %s2822_s1 = inlined_call_operand.hbm [shape: f32[8,10], index: 1, kind: input, shape index: {}]   ;;  %s2823_s2 = inlined_call_operand.hbm [shape: bf16[20,400], index: 2, kind: input, shape index: {}]   ;;  %s2824_s3 = inlined_call_operand.hbm [shape: bf16[10,400], index: 3, kind: input, shape index: {}]   ;;  %s2825_s4 = inlined_call_operand.vmem [shape: f32[1,400], index: 4, kind: input, shape index: {}]   ;;  %s2826_s5 = inlined_call_operand.hbm [shape: bf16[400,896], index: 5, kind: input, shape index: {}]   ;;  %s2827_s6 = inlined_call_operand.vmem [shape: f32[1,896], index: 6, kind: input, shape index: {}]   ;;  %s2828_s7 = inlined_call_operand.hbm [shape: f32[8,896], index: 7, kind: output, shape index: {}]  }
   0x1   :  { %13 = vsyncpa [#allocation6], 0 }
   0x2   :  { %14 = vsyncpa [#allocation9], 0 }
   0x3   :  { %15 = vsyncpa [#allocation4], 0  ;;  %s2594_s24 = smov [#allocation5]   ;;  %s2454_s28 = scalar_lea.hbm %s2822_s1, 128 }
   0x4   :  { %s32_s25 = sshll.u32 %s2594_s24, 4  ;;  %p2455_p0 = scmp.ne.s32.totalorder %s2822_s1, %s2454_s28  ;;  %s33_s25 = int_to_ptr.vmem [resolvable:$true] %s32_s25 }
   0x5   :  { %p2458_p1 = scmp.lt.u32.totalorder %s2454_s28, %s2822_s1 }
   0x7   :  { %p2460_p2 = pnand %p2458_p1, %p2455_p0 }
   0x9   :  { %2463 = shalt.err (!%p2460_p2)
}
   0xa   :  { %s2464_s10 = scalar_lea.vmem %s33_s25, 128  ;;  %p2469_p4 = scmp.lt.s32.totalorder %s33_s25, %s33_s25 }
   0xb   :  { %p2465_p3 = scmp.ne.s32.totalorder %s33_s25, %s2464_s10  ;;  %p2470_p5 = scmp.lt.s32.totalorder %s2464_s10, %s2464_s10 }
   0xd   :  { %p2471_p6 = por %p2470_p5, %p2469_p4 }
   0xf   :  { %p2472_p7 = pnand %p2471_p6, %p2465_p3 }
  0x11   :  { %2475 = shalt.err (!%p2472_p7)
}
  0x12   :  { %35 = dma.hbm_to_vmem [thread:$0]  %s2822_s1, 128, %s33_s25, [#allocation6]  }
  0x13   :  { %s2595_s13 = smov [#allocation8]   ;;  %s2596_s15 = smov [#allocation2]  }
  0x14   :  { %s53_s14 = sshll.u32 %s2595_s13, 4  ;;  %s22_s16 = sshll.u32 %s2596_s15, 4  ;;  %s54_s14 = int_to_ptr.vmem [resolvable:$true] %s53_s14  ;;  %s23_s16 = int_to_ptr.vmem [resolvable:$true] %s22_s16 }
  0x15   :  { %s2476_s19 = scalar_lea.hbm %s2824_s3, 512 }
  0x16   :  { %p2477_p8 = scmp.ne.s32.totalorder %s2824_s3, %s2476_s19  ;;  %p2480_p9 = scmp.lt.u32.totalorder %s2476_s19, %s2824_s3 }
  0x18   :  { %p2482_p10 = pnand %p2480_p9, %p2477_p8 }
  0x1a   :  { %2485 = shalt.err (!%p2482_p10)
}
  0x1b   :  { %s2486_s1 = scalar_lea.vmem %s54_s14, 512  ;;  %p2491_p12 = scmp.lt.s32.totalorder %s54_s14, %s54_s14 }
  0x1c   :  { %p2487_p11 = scmp.ne.s32.totalorder %s54_s14, %s2486_s1  ;;  %p2492_p13 = scmp.lt.s32.totalorder %s2486_s1, %s2486_s1 }
  0x1e   :  { %p2493_p0 = por %p2492_p13, %p2491_p12 }
  0x20   :  { %p2494_p1 = pnand %p2493_p0, %p2487_p11 }
  0x22   :  { %2497 = shalt.err (!%p2494_p1)
}
  0x23   :  { %s2597_s24 = smov 256   ;;  %s2598_s25 = smov 16  }
  0x24   :  { %59 = dma.hbm_to_vmem [thread:$0]  %s2824_s3, 512, %s54_s14, [#allocation9], %s2597_s24, %s2597_s24, %s2598_s25  }
  0x25   :  { %s2498_s30 = scalar_lea.hbm %s2821_s0, 128 }
  0x26   :  { %p2499_p2 = scmp.ne.s32.totalorder %s2821_s0, %s2498_s30  ;;  %p2502_p3 = scmp.lt.u32.totalorder %s2498_s30, %s2821_s0 }
  0x28   :  { %p2504_p4 = pnand %p2502_p3, %p2499_p2 }
  0x2a   :  { %2507 = shalt.err (!%p2504_p4)
}
  0x2b   :  { %s2508_s12 = scalar_lea.vmem %s23_s16, 128  ;;  %p2513_p6 = scmp.lt.s32.totalorder %s23_s16, %s23_s16 }
  0x2c   :  { %p2509_p5 = scmp.ne.s32.totalorder %s23_s16, %s2508_s12  ;;  %p2514_p7 = scmp.lt.s32.totalorder %s2508_s12, %s2508_s12 }
  0x2e   :  { %p2515_p8 = por %p2514_p7, %p2513_p6 }
  0x30   :  { %p2516_p9 = pnand %p2515_p8, %p2509_p5 }
  0x32   :  { %2519 = shalt.err (!%p2516_p9)
}
  0x33   :  { %25 = dma.hbm_to_vmem [thread:$0]  %s2821_s0, 128, %s23_s16, [#allocation3]  }
  0x34   :  { %s2599_s14 = smov [#allocation7]   ;;  %s2600_s17 = smov [#allocation10]  }
  0x35   :  { %s41_s15 = sshll.u32 %s2599_s14, 4  ;;  %s67_s18 = sshll.u32 %s2600_s17, 4  ;;  %s42_s15 = int_to_ptr.vmem [resolvable:$true] %s41_s15  ;;  %s68_s18 = int_to_ptr.vmem [resolvable:$true] %s67_s18 }
  0x36   :  { %s2520_s21 = scalar_lea.hbm %s2823_s2, 768 }
  0x37   :  { %p2521_p10 = scmp.ne.s32.totalorder %s2823_s2, %s2520_s21  ;;  %p2524_p11 = scmp.lt.u32.totalorder %s2520_s21, %s2823_s2 }
  0x39   :  { %p2526_p12 = pnand %p2524_p11, %p2521_p10 }
  0x3b   :  { %2529 = shalt.err (!%p2526_p12)
}
  0x3c   :  { %s2530_s0 = scalar_lea.vmem %s42_s15, 768  ;;  %p2535_p0 = scmp.lt.s32.totalorder %s42_s15, %s42_s15 }
  0x3d   :  { %p2531_p13 = scmp.ne.s32.totalorder %s42_s15, %s2530_s0  ;;  %p2536_p1 = scmp.lt.s32.totalorder %s2530_s0, %s2530_s0 }
  0x3f   :  { %p2537_p2 = por %p2536_p1, %p2535_p0 }
  0x41   :  { %p2538_p3 = pnand %p2537_p2, %p2531_p13 }
  0x43   :  { %2541 = shalt.err (!%p2538_p3)
}
  0x44   :  { %47 = dma.hbm_to_vmem [thread:$0]  %s2823_s2, 768, %s42_s15, [#allocation6], %s2597_s24, %s2597_s24, %s2598_s25  }
  0x45   :  { %s2542_s30 = scalar_lea.hbm %s2826_s5, 22400 }
  0x46   :  { %p2543_p4 = scmp.ne.s32.totalorder %s2826_s5, %s2542_s30  ;;  %p2546_p5 = scmp.lt.u32.totalorder %s2542_s30, %s2826_s5 }
  0x48   :  { %p2548_p6 = pnand %p2546_p5, %p2543_p4 }
  0x4a   :  { %2551 = shalt.err (!%p2548_p6)
}
  0x4b   :  { %s2552_s12 = scalar_lea.vmem %s68_s18, 22400  ;;  %p2557_p8 = scmp.lt.s32.totalorder %s68_s18, %s68_s18 }
  0x4c   :  { %p2553_p7 = scmp.ne.s32.totalorder %s68_s18, %s2552_s12  ;;  %p2558_p9 = scmp.lt.s32.totalorder %s2552_s12, %s2552_s12 }
  0x4e   :  { %p2559_p10 = por %p2558_p9, %p2557_p8 }
  0x50   :  { %p2560_p11 = pnand %p2559_p10, %p2553_p7 }
  0x52   :  { %2563 = shalt.err (!%p2560_p11)
}
  0x53   :  { %s2601_s2 = smov 448   ;;  %s2602_s24 = smov 28  }
  0x54   :  { %73 = dma.hbm_to_vmem [thread:$0]  %s2826_s5, 22400, %s68_s18, [#allocation9], %s2601_s2, %s2601_s2, %s2602_s24  }
  0x55   :  { %2586 = dma.done.wait [#allocation3], 128  }
  0x56   :  { %2587 = vsyncadd [#allocation3], 4294967168 }
  0x57   :  { %2588 = dma.done.wait [#allocation6], 896  }
  0x58   :  { %2589 = vsyncadd [#allocation6], 4294966400 }
  0x59   :  { %2590 = dma.done.wait [#allocation9], 22912  }
  0x5a   :  { %2591 = vsyncadd [#allocation9], 4294944384  ;;  %v2603_v0 = vmov 0   ;;  %vm126_vm0 = vcmask 1044480   ;;  %v94_v3 = vld [vmem:[#allocation5] sm:$0xff]  ;;  %vm122_vm1 = vcmask 80896  }
  0x5b   :  { %171 = vmatprep.mubr.bf16.mxu1 %v2603_v0  ;;  %v2160_v1 = vld [vmem:[#allocation8 + $0x4] ss:$16 sps:$4 sm:$0x1f]   ;;  %v2162_v2 = vld [vmem:[#allocation8] ss:$16 sps:$4 sm:$0x1f]   ;;  %v95_v6 = vpack.c.bf16 %v94_v3, %v94_v3 }
  0x5c   :  { %1914 = vmatprep.subr.msk.bf16.mxu1 %vm126_vm0, %v2160_v1  ;;  %v2163_v4 = vld [vmem:[#allocation8 + $0xc] ss:$16 sps:$4 sm:$0x1f]   ;;  %v128_v5 = vsel %vm126_vm0, %v2162_v2, 0  ;;  %v2168_v9 = vld [vmem:[#allocation7 + $0x4] ss:$16 sps:$4 sm:$0xff]  }
  0x5d   :  { %v2165_v7 = vld [vmem:[#allocation8 + $0x8] ss:$16 sps:$4 sm:$0x1f]   ;;  %140 = vmatpush1.bf16.msra.mxu1 %v128_v5  ;;  %v2176_v10 = vld [vmem:[#allocation10 + $0x4] ss:$28 sps:$4 sm:$0xff]   ;;  %vm255_vm2 = vcmask 1041408  }
  0x5e   :  { %1916 = vmatprep.subr.msk.bf16.mxu1 %vm126_vm0, %v2163_v4  ;;  %v134_v8 = vsel %vm126_vm0, %v2165_v7, 0  ;;  %v100_v11 = vld [vmem:[#allocation7 + $0x20] sm:$0x33]  ;;  %1525 = vmatprep.subr.bf16.mxu0 %v2176_v10  ;;  %v2181_v12 = vld [vmem:[#allocation10] ss:$28 sps:$4 sm:$0xff]   ;;  %vm251_vm3 = vcmask 162816  }
  0x5f   :  { %v2182_v13 = vld [vmem:[#allocation10 + $0x3c] ss:$28 sps:$4 sm:$0xff]   ;;  %1526 = vmatpush1.bf16.msra.mxu0 %v2181_v12  ;;  %v2166_v15 = vld [vmem:[#allocation7] ss:$16 sps:$4 sm:$0xff]   ;;  %v1923_v16 = vcombine.high %v100_v11, %v100_v11  ;;  %v1922_v17 = vcombine.low %v100_v11, %v100_v11  ;;  %v2194_v21 = vld [vmem:[#allocation10 + $0xac] ss:$28 sps:$4 sm:$0xff]  }
  0x60   :  { %1915 = vmatmul.mubr.msk.bf16.vlgmr.msra.gmra.mrb[0].mxu1 %vm122_vm1, %v95_v6  ;;  %v2187_v14 = vld [vmem:[#allocation10 + $0x38] ss:$28 sps:$4 sm:$0xff]   ;;  %1527 = vmatprep.subr.bf16.mxu0 %v2182_v13  ;;  %v2193_v19 = vld [vmem:[#allocation10 + $0x70] ss:$28 sps:$4 sm:$0xff]   ;;  %v92_v20 = vld [vmem:[#allocation2] sm:$0xff]  ;;  %vm1521_vm4 = vcmask 130048  }
  0x61   :  { %181 = vmatpush1.bf16.msra.mxu1 %v134_v8  ;;  %212 = vmatprep.mubr.bf16.mxu1 %v2603_v0  ;;  %v2188_v18 = vld [vmem:[#allocation10 + $0x74] ss:$28 sps:$4 sm:$0xff]   ;;  %v257_v22 = vsel %vm255_vm2, %v1922_v17, 0  ;;  %v2173_v23 = vld [vmem:[#allocation7 + $0xc] ss:$16 sps:$4 sm:$0xff]   ;;  %v93_v25 = vpack.c.bf16 %v92_v20, %v92_v20 }
  0x62   :  { %268 = vmatprep.subr.bf16.mxu1 %v2168_v9  ;;  %v101_v24 = vld [vmem:[#allocation7 + $0x28] sm:$0x33]  ;;  %v2199_v26 = vld [vmem:[#allocation10 + $0xa8] ss:$28 sps:$4 sm:$0xff]   ;;  %v2212_v37 = vld [vmem:[#allocation10 + $0x154] ss:$28 sps:$4 sm:$0xff]  }
  0x63   :  { %1528 = vmatpush1.bf16.msra.mxu0 %v2187_v14  ;;  %v2171_v27 = vld [vmem:[#allocation7 + $0x8] ss:$16 sps:$4 sm:$0xff]   ;;  %v1925_v28 = vcombine.high %v101_v24, %v101_v24  ;;  %v1924_v29 = vcombine.low %v101_v24, %v101_v24  ;;  %v2200_v30 = vld [vmem:[#allocation10 + $0xe4] ss:$28 sps:$4 sm:$0xff]   ;;  %v2217_v40 = vld [vmem:[#allocation10 + $0x150] ss:$28 sps:$4 sm:$0xff]  }
  0x64   :  { %1529 = vmatprep.subr.bf16.mxu0 %v2188_v18  ;;  %v2205_v31 = vld [vmem:[#allocation10 + $0xe0] ss:$28 sps:$4 sm:$0xff]   ;;  %v2180_v34 = vld [vmem:[#allocation10 + $0xc] ss:$28 sps:$4 sm:$0xff]   ;;  %v2211_v36 = vld [vmem:[#allocation10 + $0x118] ss:$28 sps:$4 sm:$0xff]  }
  0x65   :  { %v2206_v32 = vld [vmem:[#allocation10 + $0x11c] ss:$28 sps:$4 sm:$0xff]   ;;  %v263_v33 = vsel %vm255_vm2, %v1924_v29, 0  ;;  %v2178_v35 = vld [vmem:[#allocation10 + $0x8] ss:$28 sps:$4 sm:$0xff]  }
  0x66   :  { %v2186_v38 = vld [vmem:[#allocation10 + $0x44] ss:$28 sps:$4 sm:$0xff]   ;;  %v2192_v41 = vld [vmem:[#allocation10 + $0x7c] ss:$28 sps:$4 sm:$0xff]   ;;  %v2218_v42 = vld [vmem:[#allocation10 + $0x18c] ss:$28 sps:$4 sm:$0xff]  }
  0x67   :  { %1530 = vmatpush1.bf16.msra.mxu0 %v2193_v19  ;;  %v2184_v39 = vld [vmem:[#allocation10 + $0x40] ss:$28 sps:$4 sm:$0xff]   ;;  %v2223_v43 = vld [vmem:[#allocation10 + $0x188] ss:$28 sps:$4 sm:$0xff]   ;;  %v2190_v44 = vld [vmem:[#allocation10 + $0x78] ss:$28 sps:$4 sm:$0xff]  }
  0x68   :  { %1917 = vmatmul.mubr.msk.bf16.vlgmr.msra.gmra.mrb[4].mxu1 %vm122_vm1, %v95_v6  ;;  %1531 = vmatprep.subr.bf16.mxu0 %v2194_v21  ;;  %v2224_v45 = vld [vmem:[#allocation10 + $0x1c4] ss:$28 sps:$4 sm:$0xff]   ;;  %v2198_v46 = vld [vmem:[#allocation10 + $0xb4] ss:$28 sps:$4 sm:$0xff]   ;;  %v2230_v49 = vld [vmem:[#allocation10 + $0x1fc] ss:$28 sps:$4 sm:$0xff]  }
  0x69   :  { %269 = vmatpush1.bf16.msra.mxu1 %v2166_v15  ;;  %300 = vmatprep.mubr.bf16.mxu1 %v2603_v0  ;;  %v2229_v47 = vld [vmem:[#allocation10 + $0x1c0] ss:$28 sps:$4 sm:$0xff]   ;;  %v2196_v48 = vld [vmem:[#allocation10 + $0xb0] ss:$28 sps:$4 sm:$0xff]   ;;  %v2235_v51 = vld [vmem:[#allocation10 + $0x1f8] ss:$28 sps:$4 sm:$0xff]  }
  0x6a   :  { %1926 = vmatprep.subr.msk.bf16.mxu1 %vm255_vm2, %v1923_v16  ;;  %v2204_v50 = vld [vmem:[#allocation10 + $0xec] ss:$28 sps:$4 sm:$0xff]   ;;  %v2210_v53 = vld [vmem:[#allocation10 + $0x124] ss:$28 sps:$4 sm:$0xff]   ;;  %v2216_v55 = vld [vmem:[#allocation10 + $0x15c] ss:$28 sps:$4 sm:$0xff]  }
  0x6b   :  { %1532 = vmatpush1.bf16.msra.mxu0 %v2199_v26  ;;  %v2202_v52 = vld [vmem:[#allocation10 + $0xe8] ss:$28 sps:$4 sm:$0xff]   ;;  %v2208_v54 = vld [vmem:[#allocation10 + $0x120] ss:$28 sps:$4 sm:$0xff]   ;;  %v2214_v56 = vld [vmem:[#allocation10 + $0x158] ss:$28 sps:$4 sm:$0xff]  }
  0x6c   :  { %1533 = vmatprep.subr.bf16.mxu0 %v2200_v30  ;;  %v2222_v57 = vld [vmem:[#allocation10 + $0x194] ss:$28 sps:$4 sm:$0xff]   ;;  %v2228_v59 = vld [vmem:[#allocation10 + $0x1cc] ss:$28 sps:$4 sm:$0xff]   ;;  %v2234_v61 = vld [vmem:[#allocation10 + $0x204] ss:$28 sps:$4 sm:$0xff]   ;;  %v352_v30 = vlaneseq }
  0x6d   :  { %271 = vmatpush1.bf16.msra.mxu1 %v257_v22  ;;  %v2220_v58 = vld [vmem:[#allocation10 + $0x190] ss:$28 sps:$4 sm:$0xff]   ;;  %v2226_v60 = vld [vmem:[#allocation10 + $0x1c8] ss:$28 sps:$4 sm:$0xff]   ;;  %v2232_v62 = vld [vmem:[#allocation10 + $0x200] ss:$28 sps:$4 sm:$0xff]  }
  0x6e   :  { %309 = vmatprep.subr.bf16.mxu1 %v2173_v23  ;;  %v2236_v63 = vld [vmem:[#allocation10 + $0x234] ss:$28 sps:$4 sm:$0xff]   ;;  %v2240_v1 = vld [vmem:[#allocation10 + $0x23c] ss:$28 sps:$4 sm:$0xff]   ;;  %v2242_v4 = vld [vmem:[#allocation10 + $0x26c] ss:$28 sps:$4 sm:$0xff]  }
  0x6f   :  { %1534 = vmatpush1.bf16.msra.mxu0 %v2205_v31  ;;  %v2238_v2 = vld [vmem:[#allocation10 + $0x238] ss:$28 sps:$4 sm:$0xff]   ;;  %v2241_v3 = vld [vmem:[#allocation10 + $0x230] ss:$28 sps:$4 sm:$0xff]   ;;  %v2247_v7 = vld [vmem:[#allocation10 + $0x268] ss:$28 sps:$4 sm:$0xff]  }
  0x70   :  { %1927 = vmatmul.mubr.msk.bf16.vlgmr.msra.gmra.mrb[8].mxu1 %vm251_vm3, %v93_v25  ;;  %1535 = vmatprep.subr.bf16.mxu0 %v2206_v32  ;;  %v2244_v5 = vld [vmem:[#allocation10 + $0x270] ss:$28 sps:$4 sm:$0xff]   ;;  %v2248_v8 = vld [vmem:[#allocation10 + $0x2a4] ss:$28 sps:$4 sm:$0xff]   ;;  %v2254_v12 = vld [vmem:[#allocation10 + $0x2dc] ss:$28 sps:$4 sm:$0xff]  }
  0x71   :  { %310 = vmatpush1.bf16.msra.mxu1 %v2171_v27  ;;  %341 = vmatprep.mubr.bf16.mxu1 %v2603_v0  ;;  %v2246_v6 = vld [vmem:[#allocation10 + $0x274] ss:$28 sps:$4 sm:$0xff]   ;;  %v2252_v9 = vld [vmem:[#allocation10 + $0x2ac] ss:$28 sps:$4 sm:$0xff]   ;;  %v2253_v11 = vld [vmem:[#allocation10 + $0x2a0] ss:$28 sps:$4 sm:$0xff]  }
  0x72   :  { %1928 = vmatprep.subr.msk.bf16.mxu1 %vm255_vm2, %v1925_v28  ;;  %v2250_v10 = vld [vmem:[#allocation10 + $0x2a8] ss:$28 sps:$4 sm:$0xff]   ;;  %v2256_v13 = vld [vmem:[#allocation10 + $0x2e0] ss:$28 sps:$4 sm:$0xff]   ;;  %v2259_v15 = vld [vmem:[#allocation10 + $0x2d8] ss:$28 sps:$4 sm:$0xff]  }
  0x73   :  { %1536 = vmatpush1.bf16.msra.mxu0 %v2211_v36  ;;  %v2258_v14 = vld [vmem:[#allocation10 + $0x2e4] ss:$28 sps:$4 sm:$0xff]   ;;  %v2260_v16 = vld [vmem:[#allocation10 + $0x314] ss:$28 sps:$4 sm:$0xff]   ;;  %v2264_v18 = vld [vmem:[#allocation10 + $0x31c] ss:$28 sps:$4 sm:$0xff]  }
  0x74   :  { %1537 = vmatprep.subr.bf16.mxu0 %v2212_v37  ;;  %v2262_v17 = vld [vmem:[#allocation10 + $0x318] ss:$28 sps:$4 sm:$0xff]   ;;  %v2265_v19 = vld [vmem:[#allocation10 + $0x310] ss:$28 sps:$4 sm:$0xff]   ;;  %v2271_v23 = vld [vmem:[#allocation10 + $0x348] ss:$28 sps:$4 sm:$0xff]  }
  0x75   :  { %312 = vmatpush1.bf16.msra.mxu1 %v263_v33  ;;  %v2266_v20 = vld [vmem:[#allocation10 + $0x34c] ss:$28 sps:$4 sm:$0xff]   ;;  %v2270_v21 = vld [vmem:[#allocation10 + $0x354] ss:$28 sps:$4 sm:$0xff]   ;;  %v2274_v24 = vld [vmem:[#allocation10 + $0x384] ss:$28 sps:$4 sm:$0xff]  }
  0x76   :  { %1607 = vmatprep.subr.bf16.mxu1 %v2180_v34  ;;  %v2268_v22 = vld [vmem:[#allocation10 + $0x350] ss:$28 sps:$4 sm:$0xff]   ;;  %v2723_v31 = vshrl.u32 %v352_v30, 7  ;;  %v2729_v37 = vld [vmem:[%s2825_s4] sm:$0xf] }
  0x77   :  { %1538 = vmatpush1.bf16.msra.mxu0 %v2217_v40  ;;  %v2319_v30 = vld [vmem:[#allocation10 + $0x514] ss:$28 sps:$4 sm:$0xff]  }
  0x78   :  { %1929 = vmatmul.mubr.msk.bf16.vlgmr.msra.gmra.mrb[12].mxu1 %vm251_vm3, %v93_v25  ;;  %1539 = vmatprep.subr.bf16.mxu0 %v2218_v42  ;;  %v2277_v25 = vld [vmem:[#allocation10 + $0x38c] ss:$28 sps:$4 sm:$0xff]   ;;  %v354_v36 = vsub.s32 0, %v2723_v31 }
  0x79   :  { %1608 = vmatpush1.bf16.msra.mxu1 %v2178_v35 }
  0x7a   :  { %1609 = vmatprep.subr.bf16.mxu1 %v2186_v38  ;;  %v358_v38 = vsub.s32 1, %v2723_v31 }
  0x7b   :  { %1540 = vmatpush1.bf16.msra.mxu0 %v2223_v43 }
  0x7c   :  { %1541 = vmatprep.subr.bf16.mxu0 %v2224_v45 }
  0x7d   :  { %1610 = vmatpush1.bf16.msra.mxu1 %v2184_v39  ;;  %v355_v39 = vrot.slane %v2729_v37, %v354_v36 }
  0x7e   :  { %1611 = vmatprep.subr.bf16.mxu1 %v2192_v41  ;;  %v359_v41 = vrot.slane %v2729_v37, %v358_v38 }
  0x7f   :  { %1542 = vmatpush1.bf16.msra.mxu0 %v2229_v47 }
  0x80   :  { %1543 = vmatprep.subr.bf16.mxu0 %v2230_v49  ;;  %v366_v49 = vsub.s32 3, %v2723_v31 }
  0x81   :  { %1612 = vmatpush1.bf16.msra.mxu1 %v2190_v44 }
  0x82   :  { %1613 = vmatprep.subr.bf16.mxu1 %v2198_v46 }
  0x83   :  { %1544 = vmatpush1.bf16.msra.mxu0 %v2235_v51 }
  0x84   :  { %1545 = vmatprep.subr.bf16.mxu0 %v2236_v63 }
  0x85   :  { %1614 = vmatpush1.bf16.msra.mxu1 %v2196_v48 }
  0x86   :  { %1615 = vmatprep.subr.bf16.mxu1 %v2204_v50 }
  0x87   :  { %1546 = vmatpush1.bf16.msra.mxu0 %v2241_v3  ;;  %v2278_v3 = vld [vmem:[#allocation10 + $0x3b8] ss:$28 sps:$4 sm:$0xff]  }
  0x88   :  { %1547 = vmatprep.subr.bf16.mxu0 %v2242_v4  ;;  %v2281_v4 = vld [vmem:[#allocation10 + $0x3c0] ss:$28 sps:$4 sm:$0xff]  }
  0x89   :  { %1616 = vmatpush1.bf16.msra.mxu1 %v2202_v52 }
  0x8a   :  { %1617 = vmatprep.subr.bf16.mxu1 %v2210_v53 }
  0x8b   :  { %1548 = vmatpush1.bf16.msra.mxu0 %v2247_v7 }
  0x8c   :  { %1549 = vmatprep.subr.bf16.mxu0 %v2248_v8 }
  0x8d   :  { %1618 = vmatpush1.bf16.msra.mxu1 %v2208_v54  ;;  %v367_v54 = vrot.slane %v2729_v37, %v366_v49 }
  0x8e   :  { %1619 = vmatprep.subr.bf16.mxu1 %v2216_v55  ;;  %v2272_v55 = vld [vmem:[#allocation10 + $0x380] ss:$28 sps:$4 sm:$0xff]  }
  0x8f   :  { %1550 = vmatpush1.bf16.msra.mxu0 %v2253_v11  ;;  %v2292_v11 = vld [vmem:[#allocation10 + $0x42c] ss:$28 sps:$4 sm:$0xff]  }
  0x90   :  { %1551 = vmatprep.subr.bf16.mxu0 %v2254_v12  ;;  %v2295_v12 = vld [vmem:[#allocation10 + $0x434] ss:$28 sps:$4 sm:$0xff]  }
  0x91   :  { %1620 = vmatpush1.bf16.msra.mxu1 %v2214_v56  ;;  %v2275_v56 = vld [vmem:[#allocation10 + $0x388] ss:$28 sps:$4 sm:$0xff]  }
  0x92   :  { %1621 = vmatprep.subr.bf16.mxu1 %v2222_v57 }
  0x93   :  { %1552 = vmatpush1.bf16.msra.mxu0 %v2259_v15  ;;  %v2298_v15 = vld [vmem:[#allocation10 + $0x464] ss:$28 sps:$4 sm:$0xff]  }
  0x94   :  { %1553 = vmatprep.subr.bf16.mxu0 %v2260_v16  ;;  %v2301_v16 = vld [vmem:[#allocation10 + $0x46c] ss:$28 sps:$4 sm:$0xff]  }
  0x95   :  { %1622 = vmatpush1.bf16.msra.mxu1 %v2220_v58 }
  0x96   :  { %1623 = vmatprep.subr.bf16.mxu1 %v2228_v59 }
  0x97   :  { %1554 = vmatpush1.bf16.msra.mxu0 %v2265_v19  ;;  %v2304_v19 = vld [vmem:[#allocation10 + $0x49c] ss:$28 sps:$4 sm:$0xff]  }
  0x98   :  { %1555 = vmatprep.subr.bf16.mxu0 %v2266_v20  ;;  %v2307_v20 = vld [vmem:[#allocation10 + $0x4a4] ss:$28 sps:$4 sm:$0xff]  }
  0x99   :  { %1624 = vmatpush1.bf16.msra.mxu1 %v2226_v60  ;;  %v2280_v60 = vld [vmem:[#allocation10 + $0x3bc] ss:$28 sps:$4 sm:$0xff]  }
  0x9a   :  { %1625 = vmatprep.subr.bf16.mxu1 %v2234_v61  ;;  %v2283_v61 = vld [vmem:[#allocation10 + $0x3c4] ss:$28 sps:$4 sm:$0xff]  }
  0x9b   :  { %1556 = vmatpush1.bf16.msra.mxu0 %v2271_v23  ;;  %v362_v23 = vsub.s32 2, %v2723_v31 }
  0x9c   :  { %1566 = vmatprep.subr.bf16.mxu0 %v2274_v24  ;;  %v2310_v24 = vld [vmem:[#allocation10 + $0x4d4] ss:$28 sps:$4 sm:$0xff]  }
  0x9d   :  { %1626 = vmatpush1.bf16.msra.mxu1 %v2232_v62 }
  0x9e   :  { %1627 = vmatprep.subr.bf16.mxu1 %v2240_v1 }
  0xa1   :  { %1628 = vmatpush1.bf16.msra.mxu1 %v2238_v2 }
  0xa2   :  { %1629 = vmatprep.subr.bf16.mxu1 %v2246_v6  ;;  %v2289_v6 = vld [vmem:[#allocation10 + $0x3fc] ss:$28 sps:$4 sm:$0xff]  }
  0xa5   :  { %1630 = vmatpush1.bf16.msra.mxu1 %v2244_v5  ;;  %v2286_v5 = vld [vmem:[#allocation10 + $0x3f4] ss:$28 sps:$4 sm:$0xff]  }
  0xa6   :  { %1631 = vmatprep.subr.bf16.mxu1 %v2252_v9  ;;  %v2284_v9 = vld [vmem:[#allocation10 + $0x3f0] ss:$28 sps:$4 sm:$0xff]  }
  0xa9   :  { %1632 = vmatpush1.bf16.msra.mxu1 %v2250_v10  ;;  %v2287_v10 = vld [vmem:[#allocation10 + $0x3f8] ss:$28 sps:$4 sm:$0xff]  }
  0xaa   :  { %1633 = vmatprep.subr.bf16.mxu1 %v2258_v14  ;;  %v2293_v14 = vld [vmem:[#allocation10 + $0x430] ss:$28 sps:$4 sm:$0xff]  }
  0xad   :  { %1634 = vmatpush1.bf16.msra.mxu1 %v2256_v13  ;;  %v2290_v13 = vld [vmem:[#allocation10 + $0x428] ss:$28 sps:$4 sm:$0xff]  }
  0xae   :  { %1635 = vmatprep.subr.bf16.mxu1 %v2264_v18  ;;  %v2299_v18 = vld [vmem:[#allocation10 + $0x468] ss:$28 sps:$4 sm:$0xff]  }
  0xb1   :  { %1636 = vmatpush1.bf16.msra.mxu1 %v2262_v17  ;;  %v2296_v17 = vld [vmem:[#allocation10 + $0x460] ss:$28 sps:$4 sm:$0xff]  }
  0xb2   :  { %1637 = vmatprep.subr.bf16.mxu1 %v2270_v21  ;;  %v2302_v21 = vld [vmem:[#allocation10 + $0x498] ss:$28 sps:$4 sm:$0xff]  }
  0xb5   :  { %1638 = vmatpush1.bf16.msra.mxu1 %v2268_v22  ;;  %v2305_v22 = vld [vmem:[#allocation10 + $0x4a0] ss:$28 sps:$4 sm:$0xff]  }
  0xb6   :  { %1648 = vmatprep.subr.bf16.mxu1 %v2277_v25  ;;  %v2313_v25 = vld [vmem:[#allocation10 + $0x4dc] ss:$28 sps:$4 sm:$0xff]  }
 0x133   :  { %v173_v26 = vpop.f32.mrb[0].mxu1 }
 0x134   :  { %v175_v27 = vpop.f32.mrb[1].mxu1 }
 0x135   :  { %v177_v28 = vpop.f32.mrb[2].mxu1 }
 0x136   :  { %v178_v29 = vpop.f32.mrb[3].mxu1  ;;  %v363_v28 = vrot.slane %v2729_v37, %v362_v23  ;;  %v2328_v37 = vld [vmem:[#allocation10 + $0x14] ss:$28 sps:$4 sm:$0xff]  }
 0x137   :  { %v2316_v29 = vld [vmem:[#allocation10 + $0x50c] ss:$28 sps:$4 sm:$0xff]  }
 0x13b   :  { %v214_v32 = vpop.f32.mrb[4].mxu1 }
 0x13c   :  { %v216_v33 = vpop.f32.mrb[5].mxu1 }
 0x13d   :  { %v218_v34 = vpop.f32.mrb[6].mxu1 }
 0x13e   :  { %v219_v35 = vpop.f32.mrb[7].mxu1 }
 0x13f   :  { %v2322_v35 = vld [vmem:[#allocation10 + $0x544] ss:$28 sps:$4 sm:$0xff]  }
 0x143   :  { %v302_v40 = vpop.f32.mrb[8].mxu1 }
 0x144   :  { %v303_v42 = vadd.f32 %v302_v40, %v173_v26  ;;  %v304_v43 = vpop.f32.mrb[9].mxu1  ;;  %v2308_v26 = vld [vmem:[#allocation10 + $0x4d0] ss:$28 sps:$4 sm:$0xff]   ;;  %v2320_v40 = vld [vmem:[#allocation10 + $0x540] ss:$28 sps:$4 sm:$0xff]  }
 0x145   :  { %v305_v44 = vadd.f32 %v304_v43, %v175_v27  ;;  %v306_v45 = vpop.f32.mrb[10].mxu1  ;;  %v2311_v27 = vld [vmem:[#allocation10 + $0x4d8] ss:$28 sps:$4 sm:$0xff]  }
 0x146   :  { %v372_v46 = vadd.f32 %v355_v39, %v303_v42  ;;  %v307_v47 = vpop.f32.mrb[11].mxu1  ;;  %v2325_v39 = vld [vmem:[#allocation10 + $0x54c] ss:$28 sps:$4 sm:$0xff]   ;;  %v2329_v43 = vld [vmem:[#allocation10 + $0x1d8] ss:$28 sps:$4 sm:$0xff]  }
 0x147   :  { %v373_v48 = vadd.f32 %v359_v41, %v305_v44  ;;  %v2323_v41 = vld [vmem:[#allocation10 + $0x548] ss:$28 sps:$4 sm:$0xff]   ;;  %v2326_v44 = vld [vmem:[#allocation10 + $0x10] ss:$28 sps:$4 sm:$0xff]  }
 0x148   :  { %v376_v50 = vmax.f32 %v372_v46, 0.0  ;;  %v2330_v46 = vld [vmem:[#allocation10 + $0x18] ss:$28 sps:$4 sm:$0xff]   ;;  %v2333_v47 = vld [vmem:[#allocation10 + $0x4c] ss:$28 sps:$4 sm:$0xff]  }
 0x149   :  { %v377_v51 = vmax.f32 %v373_v48, 0.0  ;;  %v2334_v48 = vld [vmem:[#allocation10 + $0x210] ss:$28 sps:$4 sm:$0xff]  }
 0x14a   :  { %v2744_v57 = vpack.c.bf16 %v376_v50, %v376_v50  ;;  %v2331_v50 = vld [vmem:[#allocation10 + $0x48] ss:$28 sps:$4 sm:$0xff]  }
 0x14b   :  { %v2739_v52 = vpack.c.bf16 %v377_v51, %v377_v51  ;;  %v343_v53 = vpop.f32.mrb[12].mxu1  ;;  %v2335_v51 = vld [vmem:[#allocation10 + $0x50] ss:$28 sps:$4 sm:$0xff]  }
 0x14c   :  { %v2746_v58 = vadd.f32 %v343_v53, %v214_v32  ;;  %v345_v59 = vpop.f32.mrb[13].mxu1  ;;  %v2314_v32 = vld [vmem:[#allocation10 + $0x508] ss:$28 sps:$4 sm:$0xff]  }
 0x14d   :  { %v346_v62 = vadd.f32 %v345_v59, %v216_v33  ;;  %1557 = vmatprep.mubr.bf16.mxu0 %v2739_v52  ;;  %1639 = vmatprep.mubr.bf16.mxu1 %v2739_v52  ;;  %v347_v63 = vpop.f32.mrb[14].mxu1  ;;  %v2317_v33 = vld [vmem:[#allocation10 + $0x510] ss:$28 sps:$4 sm:$0xff]   ;;  %v2338_v53 = vld [vmem:[#allocation10 + $0x84] ss:$28 sps:$4 sm:$0xff]  }
 0x14e   :  { %1558 = vmatmul.mubr.bf16.vlgmr.msra.gmra.mrb[0].mxu0 %v2744_v57  ;;  %1640 = vmatmul.mubr.bf16.vlgmr.msra.gmra.mrb[16].mxu1 %v2744_v57  ;;  %v348_v1 = vpop.f32.mrb[15].mxu1  ;;  %v374_v34 = vadd.f32 %v363_v28, %v2746_v58  ;;  %v2343_v58 = vld [vmem:[#allocation10 + $0xbc] ss:$28 sps:$4 sm:$0xff]   ;;  %v2346_v63 = vld [vmem:[#allocation10 + $0xf0] ss:$28 sps:$4 sm:$0xff]  }
 0x14f   :  { %v375_v2 = vadd.f32 %v367_v54, %v346_v62  ;;  %1567 = vmatpush1.bf16.msra.mxu0 %v2272_v55  ;;  %1649 = vmatpush1.bf16.msra.mxu1 %v2275_v56  ;;  %v2339_v54 = vld [vmem:[#allocation10 + $0x248] ss:$28 sps:$4 sm:$0xff]   ;;  %v2336_v55 = vld [vmem:[#allocation10 + $0x80] ss:$28 sps:$4 sm:$0xff]   ;;  %v2348_v62 = vld [vmem:[#allocation10 + $0xf4] ss:$28 sps:$4 sm:$0xff]  }
 0x150   :  { %1568 = vmatprep.subr.bf16.mxu0 %v2280_v60  ;;  %1650 = vmatprep.subr.bf16.mxu1 %v2283_v61  ;;  %v378_v42 = vmax.f32 %v374_v34, 0.0  ;;  %v2340_v56 = vld [vmem:[#allocation10 + $0x88] ss:$28 sps:$4 sm:$0xff]   ;;  %v2344_v59 = vld [vmem:[#allocation10 + $0x280] ss:$28 sps:$4 sm:$0xff]  }
 0x151   :  { %v379_v7 = vmax.f32 %v375_v2, 0.0  ;;  %v2341_v60 = vld [vmem:[#allocation10 + $0xb8] ss:$28 sps:$4 sm:$0xff]   ;;  %v2345_v61 = vld [vmem:[#allocation10 + $0xc0] ss:$28 sps:$4 sm:$0xff]  }
 0x152   :  { %v2763_v45 = vpack.c.bf16 %v378_v42, %v378_v42  ;;  %v2350_v1 = vld [vmem:[#allocation10 + $0xf8] ss:$28 sps:$4 sm:$0xff]   ;;  %v2353_v2 = vld [vmem:[#allocation10 + $0x12c] ss:$28 sps:$4 sm:$0xff]  }
 0x153   :  { %v2752_v8 = vpack.c.bf16 %v379_v7, %v379_v7  ;;  %1569 = vmatpush1.bf16.msra.mxu0 %v2278_v3  ;;  %1651 = vmatpush1.bf16.msra.mxu1 %v2281_v4  ;;  %v2354_v3 = vld [vmem:[#allocation10 + $0x2f0] ss:$28 sps:$4 sm:$0xff]   ;;  %v2351_v4 = vld [vmem:[#allocation10 + $0x128] ss:$28 sps:$4 sm:$0xff]   ;;  %v2394_v42 = vld [vmem:[#allocation10 + $0x358] ss:$28 sps:$4 sm:$0xff]  }
 0x154   :  { %1570 = vmatprep.subr.bf16.mxu0 %v2286_v5  ;;  %1652 = vmatprep.subr.bf16.mxu1 %v2289_v6  ;;  %v2355_v5 = vld [vmem:[#allocation10 + $0x130] ss:$28 sps:$4 sm:$0xff]   ;;  %v2358_v6 = vld [vmem:[#allocation10 + $0x164] ss:$28 sps:$4 sm:$0xff]  }
 0x155   :  { %2105 = vmatprep.mubr.msk.bf16.mxu0 %vm1521_vm4, %v2752_v8  ;;  %2106 = vmatprep.mubr.msk.bf16.mxu1 %vm1521_vm4, %v2752_v8  ;;  %v2359_v7 = vld [vmem:[#allocation10 + $0x328] ss:$28 sps:$4 sm:$0xff]   ;;  %v2384_v28 = vld [vmem:[#allocation10 + $0x2b4] ss:$28 sps:$4 sm:$0xff]  }
 0x156   :  { %v2389_v34 = vld [vmem:[#allocation10 + $0x4b0] ss:$28 sps:$4 sm:$0xff]  }
 0x157   :  { %1571 = vmatpush1.bf16.msra.mxu0 %v2284_v9  ;;  %1653 = vmatpush1.bf16.msra.mxu1 %v2287_v10  ;;  %v2356_v9 = vld [vmem:[#allocation10 + $0x160] ss:$28 sps:$4 sm:$0xff]   ;;  %v2360_v10 = vld [vmem:[#allocation10 + $0x168] ss:$28 sps:$4 sm:$0xff]  }
 0x158   :  { %1572 = vmatprep.subr.bf16.mxu0 %v2292_v11  ;;  %1654 = vmatprep.subr.bf16.mxu1 %v2295_v12  ;;  %v2363_v11 = vld [vmem:[#allocation10 + $0x19c] ss:$28 sps:$4 sm:$0xff]  }
 0x159   :  { %v2364_v12 = vld [vmem:[#allocation10 + $0x360] ss:$28 sps:$4 sm:$0xff]  }
 0x15b   :  { %1573 = vmatpush1.bf16.msra.mxu0 %v2290_v13  ;;  %1655 = vmatpush1.bf16.msra.mxu1 %v2293_v14  ;;  %v2361_v13 = vld [vmem:[#allocation10 + $0x198] ss:$28 sps:$4 sm:$0xff]   ;;  %v2365_v14 = vld [vmem:[#allocation10 + $0x1a0] ss:$28 sps:$4 sm:$0xff]  }
 0x15c   :  { %1574 = vmatprep.subr.bf16.mxu0 %v2298_v15  ;;  %1656 = vmatprep.subr.bf16.mxu1 %v2301_v16  ;;  %v2368_v15 = vld [vmem:[#allocation10 + $0x1d4] ss:$28 sps:$4 sm:$0xff]  }
 0x15d   :  { %v2366_v16 = vld [vmem:[#allocation10 + $0x1d0] ss:$28 sps:$4 sm:$0xff]  }
 0x15f   :  { %1575 = vmatpush1.bf16.msra.mxu0 %v2296_v17  ;;  %1657 = vmatpush1.bf16.msra.mxu1 %v2299_v18  ;;  %v2369_v17 = vld [vmem:[#allocation10 + $0x398] ss:$28 sps:$4 sm:$0xff]   ;;  %v2372_v18 = vld [vmem:[#allocation10 + $0x20c] ss:$28 sps:$4 sm:$0xff]  }
 0x160   :  { %1576 = vmatprep.subr.bf16.mxu0 %v2304_v19  ;;  %1658 = vmatprep.subr.bf16.mxu1 %v2307_v20  ;;  %v2370_v19 = vld [vmem:[#allocation10 + $0x208] ss:$28 sps:$4 sm:$0xff]   ;;  %v2373_v20 = vld [vmem:[#allocation10 + $0x3d0] ss:$28 sps:$4 sm:$0xff]  }
 0x163   :  { %1577 = vmatpush1.bf16.msra.mxu0 %v2302_v21  ;;  %1659 = vmatpush1.bf16.msra.mxu1 %v2305_v22  ;;  %v2376_v21 = vld [vmem:[#allocation10 + $0x244] ss:$28 sps:$4 sm:$0xff]  }
 0x164   :  { %1578 = vmatprep.subr.bf16.mxu0 %v2310_v24  ;;  %1660 = vmatprep.subr.bf16.mxu1 %v2313_v25  ;;  %v2374_v22 = vld [vmem:[#allocation10 + $0x240] ss:$28 sps:$4 sm:$0xff]   ;;  %v2377_v24 = vld [vmem:[#allocation10 + $0x408] ss:$28 sps:$4 sm:$0xff]  }
 0x165   :  { %v2380_v25 = vld [vmem:[#allocation10 + $0x27c] ss:$28 sps:$4 sm:$0xff]  }
 0x167   :  { %1579 = vmatpush1.bf16.msra.mxu0 %v2308_v26  ;;  %1661 = vmatpush1.bf16.msra.mxu1 %v2311_v27  ;;  %v2378_v26 = vld [vmem:[#allocation10 + $0x278] ss:$28 sps:$4 sm:$0xff]   ;;  %v2381_v27 = vld [vmem:[#allocation10 + $0x440] ss:$28 sps:$4 sm:$0xff]  }
 0x168   :  { %1580 = vmatprep.subr.bf16.mxu0 %v2316_v29  ;;  %1662 = vmatprep.subr.bf16.mxu1 %v2319_v30  ;;  %v2382_v29 = vld [vmem:[#allocation10 + $0x2b0] ss:$28 sps:$4 sm:$0xff]   ;;  %v2385_v30 = vld [vmem:[#allocation10 + $0x478] ss:$28 sps:$4 sm:$0xff]  }
 0x16b   :  { %1581 = vmatpush1.bf16.msra.mxu0 %v2314_v32  ;;  %1663 = vmatpush1.bf16.msra.mxu1 %v2317_v33  ;;  %v2388_v32 = vld [vmem:[#allocation10 + $0x2ec] ss:$28 sps:$4 sm:$0xff]  }
 0x16c   :  { %1582 = vmatprep.subr.bf16.mxu0 %v2322_v35  ;;  %1664 = vmatprep.subr.bf16.mxu1 %v2325_v39  ;;  %v2386_v33 = vld [vmem:[#allocation10 + $0x2e8] ss:$28 sps:$4 sm:$0xff]   ;;  %v2390_v39 = vld [vmem:[#allocation10 + $0x320] ss:$28 sps:$4 sm:$0xff]  }
 0x16d   :  { %v2392_v35 = vld [vmem:[#allocation10 + $0x324] ss:$28 sps:$4 sm:$0xff]  }
 0x16f   :  { %1583 = vmatpush1.bf16.msra.mxu0 %v2320_v40  ;;  %1665 = vmatpush1.bf16.msra.mxu1 %v2323_v41  ;;  %v2393_v40 = vld [vmem:[#allocation10 + $0x4e8] ss:$28 sps:$4 sm:$0xff]   ;;  %v2396_v41 = vld [vmem:[#allocation10 + $0x35c] ss:$28 sps:$4 sm:$0xff]  }
 0x170   :  { %1689 = vmatprep.subr.bf16.mxu0 %v2328_v37  ;;  %2109 = vmatprep.subr.bf16.mxu1 %v2329_v43  ;;  %v2397_v37 = vld [vmem:[#allocation10 + $0x520] ss:$28 sps:$4 sm:$0xff]   ;;  %v2400_v43 = vld [vmem:[#allocation10 + $0x394] ss:$28 sps:$4 sm:$0xff]  }
 0x172   :  { %1599 = vmatmul.mubr.bf16.vlgmr.msra.gmra.mrb[0].mxu0 %v2763_v45  ;;  %1681 = vmatmul.mubr.bf16.vlgmr.msra.gmra.mrb[16].mxu1 %v2763_v45 }
 0x173   :  { %1690 = vmatpush1.bf16.msra.mxu0 %v2326_v44  ;;  %1721 = vmatprep.mubr.bf16.mxu0 %v2739_v52  ;;  %v2398_v44 = vld [vmem:[#allocation10 + $0x390] ss:$28 sps:$4 sm:$0xff]  }
 0x174   :  { %2110 = vmatpush3.bf16.msra.mxu1 %v2330_v46  ;;  %1803 = vmatprep.mubr.bf16.mxu1 %v2739_v52  ;;  %v2349_v52 = vld [vmem:[#allocation10 + $0x2b8] ss:$28 sps:$4 sm:$0xff]  }
 0x175   :  { %1691 = vmatprep.subr.bf16.mxu0 %v2333_v47  ;;  %2111 = vmatprep.subr.bf16.mxu1 %v2334_v48  ;;  %v2401_v46 = vld [vmem:[#allocation10 + $0x558] ss:$28 sps:$4 sm:$0xff]   ;;  %v2404_v47 = vld [vmem:[#allocation10 + $0x3cc] ss:$28 sps:$4 sm:$0xff]  }
 0x176   :  { %v2402_v48 = vld [vmem:[#allocation10 + $0x3c8] ss:$28 sps:$4 sm:$0xff]  }
 0x177   :  { %1692 = vmatpush1.bf16.msra.mxu0 %v2331_v50  ;;  %v2407_v50 = vld [vmem:[#allocation10 + $0x404] ss:$28 sps:$4 sm:$0xff]  }
 0x178   :  { %2112 = vmatpush3.bf16.msra.mxu1 %v2335_v51  ;;  %1693 = vmatprep.subr.bf16.mxu0 %v2338_v53  ;;  %v2405_v51 = vld [vmem:[#allocation10 + $0x400] ss:$28 sps:$4 sm:$0xff]  }
 0x179   :  { %2113 = vmatprep.subr.bf16.mxu1 %v2339_v54  ;;  %v2410_v53 = vld [vmem:[#allocation10 + $0x43c] ss:$28 sps:$4 sm:$0xff]  }
 0x17a   :  { %v2408_v54 = vld [vmem:[#allocation10 + $0x438] ss:$28 sps:$4 sm:$0xff]  }
 0x17b   :  { %1694 = vmatpush1.bf16.msra.mxu0 %v2336_v55  ;;  %v2416_v55 = vld [vmem:[#allocation10 + $0x4ac] ss:$28 sps:$4 sm:$0xff]  }
 0x17c   :  { %2114 = vmatpush3.bf16.msra.mxu1 %v2340_v56  ;;  %1695 = vmatprep.subr.bf16.mxu0 %v2343_v58  ;;  %v2419_v56 = vld [vmem:[#allocation10 + $0x4e4] ss:$28 sps:$4 sm:$0xff]  }
 0x17d   :  { %2115 = vmatprep.subr.bf16.mxu1 %v2344_v59  ;;  %v2417_v58 = vld [vmem:[#allocation10 + $0x4e0] ss:$28 sps:$4 sm:$0xff]  }
 0x17e   :  { %v2422_v59 = vld [vmem:[#allocation10 + $0x51c] ss:$28 sps:$4 sm:$0xff]  }
 0x17f   :  { %1696 = vmatpush1.bf16.msra.mxu0 %v2341_v60  ;;  %v2420_v60 = vld [vmem:[#allocation10 + $0x518] ss:$28 sps:$4 sm:$0xff]  }
 0x180   :  { %2116 = vmatpush3.bf16.msra.mxu1 %v2345_v61  ;;  %1697 = vmatprep.subr.bf16.mxu0 %v2348_v62  ;;  %v2425_v61 = vld [vmem:[#allocation10 + $0x554] ss:$28 sps:$4 sm:$0xff]  }
 0x181   :  { %2117 = vmatprep.subr.bf16.mxu1 %v2349_v52  ;;  %v2423_v62 = vld [vmem:[#allocation10 + $0x550] ss:$28 sps:$4 sm:$0xff]   ;;  %v2789_v52 = vld [vmem:[%s2827_s6] sm:$0xff]  ;;  %s2604_s6 = smov [#allocation11]  }
 0x182   :  { %s1899_s15 = sshll.u32 %s2604_s6, 4  ;;  %s1900_s15 = int_to_ptr.vmem [resolvable:$true] %s1899_s15 }
 0x183   :  { %1698 = vmatpush1.bf16.msra.mxu0 %v2346_v63  ;;  %v589_v63 = vrot.slane %v2789_v52, %v354_v36  ;;  %s2564_s17 = scalar_lea.vmem %s1900_s15, 896  ;;  %p2569_p13 = scmp.lt.s32.totalorder %s1900_s15, %s1900_s15 }
 0x184   :  { %2118 = vmatpush3.bf16.msra.mxu1 %v2350_v1  ;;  %1699 = vmatprep.subr.bf16.mxu0 %v2353_v2  ;;  %v597_v1 = vrot.slane %v2789_v52, %v362_v23  ;;  %v593_v2 = vrot.slane %v2789_v52, %v358_v38  ;;  %p2565_p12 = scmp.ne.s32.totalorder %s1900_s15, %s2564_s17  ;;  %p2570_p0 = scmp.lt.s32.totalorder %s2564_s17, %s2564_s17 }
 0x185   :  { %2119 = vmatprep.subr.bf16.mxu1 %v2354_v3 }
 0x186   :  { %p2571_p1 = por %p2570_p0, %p2569_p13 }
 0x187   :  { %1700 = vmatpush1.bf16.msra.mxu0 %v2351_v4 }
 0x188   :  { %2120 = vmatpush3.bf16.msra.mxu1 %v2355_v5  ;;  %1701 = vmatprep.subr.bf16.mxu0 %v2358_v6  ;;  %p2572_p2 = pnand %p2571_p1, %p2565_p12 }
 0x189   :  { %2121 = vmatprep.subr.bf16.mxu1 %v2359_v7 }
 0x18b   :  { %1702 = vmatpush1.bf16.msra.mxu0 %v2356_v9 }
 0x18c   :  { %2122 = vmatpush3.bf16.msra.mxu1 %v2360_v10  ;;  %1703 = vmatprep.subr.bf16.mxu0 %v2363_v11 }
 0x18d   :  { %2123 = vmatprep.subr.bf16.mxu1 %v2364_v12 }
 0x18f   :  { %1704 = vmatpush1.bf16.msra.mxu0 %v2361_v13 }
 0x190   :  { %2124 = vmatpush3.bf16.msra.mxu1 %v2365_v14  ;;  %1705 = vmatprep.subr.bf16.mxu0 %v2368_v15 }
 0x191   :  { %1811 = vmatprep.subr.bf16.mxu1 %v2603_v0 }
 0x193   :  { %1804 = vmatmul.mubr.bf16.vlgmr.msra.gmra.mrb[20].mxu1 %v2744_v57  ;;  %1706 = vmatpush1.bf16.msra.mxu0 %v2366_v16 }
 0x194   :  { %1812 = vmatpush1.bf16.msra.mxu1 %v2369_v17  ;;  %2108 = vmatprep.mubr.msk.bf16.mxu1 %vm1521_vm4, %v2752_v8 }
 0x195   :  { %1707 = vmatprep.subr.bf16.mxu0 %v2372_v18  ;;  %1813 = vmatprep.subr.bf16.mxu1 %v2603_v0 }
 0x197   :  { %1708 = vmatpush1.bf16.msra.mxu0 %v2370_v19 }
 0x198   :  { %1814 = vmatpush1.bf16.msra.mxu1 %v2373_v20  ;;  %1709 = vmatprep.subr.bf16.mxu0 %v2376_v21 }
 0x199   :  { %1815 = vmatprep.subr.bf16.mxu1 %v2603_v0 }
 0x19b   :  { %1710 = vmatpush1.bf16.msra.mxu0 %v2374_v22 }
 0x19c   :  { %1816 = vmatpush1.bf16.msra.mxu1 %v2377_v24  ;;  %1711 = vmatprep.subr.bf16.mxu0 %v2380_v25 }
 0x19d   :  { %1817 = vmatprep.subr.bf16.mxu1 %v2603_v0 }
 0x19f   :  { %1712 = vmatpush1.bf16.msra.mxu0 %v2378_v26 }
 0x1a0   :  { %1818 = vmatpush1.bf16.msra.mxu1 %v2381_v27  ;;  %1713 = vmatprep.subr.bf16.mxu0 %v2384_v28 }
 0x1a1   :  { %1819 = vmatprep.subr.bf16.mxu1 %v2603_v0 }
 0x1a3   :  { %1714 = vmatpush1.bf16.msra.mxu0 %v2382_v29 }
 0x1a4   :  { %1820 = vmatpush1.bf16.msra.mxu1 %v2385_v30  ;;  %1715 = vmatprep.subr.bf16.mxu0 %v2388_v32 }
 0x1a5   :  { %1821 = vmatprep.subr.bf16.mxu1 %v2603_v0 }
 0x1a7   :  { %1716 = vmatpush1.bf16.msra.mxu0 %v2386_v33 }
 0x1a8   :  { %1822 = vmatpush1.bf16.msra.mxu1 %v2389_v34  ;;  %1717 = vmatprep.subr.bf16.mxu0 %v2392_v35 }
 0x1a9   :  { %1823 = vmatprep.subr.bf16.mxu1 %v2603_v0 }
 0x1ab   :  { %1718 = vmatpush1.bf16.msra.mxu0 %v2390_v39 }
 0x1ac   :  { %1824 = vmatpush1.bf16.msra.mxu1 %v2393_v40  ;;  %1719 = vmatprep.subr.bf16.mxu0 %v2396_v41 }
 0x1ad   :  { %1825 = vmatprep.subr.bf16.mxu1 %v2603_v0 }
 0x1af   :  { %1720 = vmatpush1.bf16.msra.mxu0 %v2394_v42  ;;  %v612_v42 = vsub.s32 6, %v2723_v31 }
 0x1b0   :  { %1826 = vmatpush1.bf16.msra.mxu1 %v2397_v37  ;;  %1730 = vmatprep.subr.bf16.mxu0 %v2400_v43 }
 0x1b1   :  { %1827 = vmatprep.subr.bf16.mxu1 %v2603_v0  ;;  %v2413_v0 = vld [vmem:[#allocation10 + $0x474] ss:$28 sps:$4 sm:$0xff]   ;;  %v613_v37 = vrot.slane %v2789_v52, %v612_v42 }
 0x1b2   :  { %1722 = vmatmul.mubr.bf16.vlgmr.msra.gmra.mrb[4].mxu0 %v2744_v57  ;;  %v2411_v57 = vld [vmem:[#allocation10 + $0x470] ss:$28 sps:$4 sm:$0xff]  }
 0x1b3   :  { %1731 = vmatpush1.bf16.msra.mxu0 %v2398_v44  ;;  %2107 = vmatprep.mubr.msk.bf16.mxu0 %vm1521_vm4, %v2752_v8  ;;  %v2414_v8 = vld [vmem:[#allocation10 + $0x4a8] ss:$28 sps:$4 sm:$0xff]  }
 0x1b4   :  { %1828 = vmatpush1.bf16.msra.mxu1 %v2401_v46  ;;  %1732 = vmatprep.subr.bf16.mxu0 %v2404_v47 }
 0x1b7   :  { %1844 = vmatmul.mubr.bf16.vlgmr.msra.gmra.mrb[24].mxu1 %v2763_v45  ;;  %1733 = vmatpush1.bf16.msra.mxu0 %v2402_v48 }
 0x1b8   :  { %1734 = vmatprep.subr.bf16.mxu0 %v2407_v50 }
 0x1bb   :  { %1735 = vmatpush1.bf16.msra.mxu0 %v2405_v51 }
 0x1bc   :  { %1736 = vmatprep.subr.bf16.mxu0 %v2410_v53 }
 0x1bf   :  { %1737 = vmatpush1.bf16.msra.mxu0 %v2408_v54 }
 0x1c0   :  { %1738 = vmatprep.subr.bf16.mxu0 %v2413_v0 }
 0x1c3   :  { %1739 = vmatpush1.bf16.msra.mxu0 %v2411_v57  ;;  %v604_v57 = vsub.s32 4, %v2723_v31 }
 0x1c4   :  { %1740 = vmatprep.subr.bf16.mxu0 %v2416_v55  ;;  %v608_v55 = vsub.s32 5, %v2723_v31 }
 0x1c7   :  { %1741 = vmatpush1.bf16.msra.mxu0 %v2414_v8  ;;  %v605_v8 = vrot.slane %v2789_v52, %v604_v57 }
 0x1c8   :  { %1742 = vmatprep.subr.bf16.mxu0 %v2419_v56  ;;  %v609_v56 = vrot.slane %v2789_v52, %v608_v55 }
 0x1cb   :  { %1743 = vmatpush1.bf16.msra.mxu0 %v2417_v58 }
 0x1cc   :  { %1744 = vmatprep.subr.bf16.mxu0 %v2422_v59 }
 0x1cf   :  { %1745 = vmatpush1.bf16.msra.mxu0 %v2420_v60 }
 0x1d0   :  { %1746 = vmatprep.subr.bf16.mxu0 %v2425_v61 }
 0x1d3   :  { %1747 = vmatpush1.bf16.msra.mxu0 %v2423_v62 }
 0x1d6   :  { %1763 = vmatmul.mubr.bf16.vlgmr.msra.gmra.mrb[4].mxu0 %v2763_v45  ;;  %v601_v45 = vrot.slane %v2789_v52, %v366_v49 }
 0x245   :  { %v1600_v3 = vpop.f32.mrb[0].mxu0  ;;  %v1682_v4 = vpop.f32.mrb[16].mxu1 }
 0x246   :  { %v2131_v5 = vadd.f32 %v1600_v3, %v589_v63  ;;  %v2133_v6 = vadd.f32 %v1682_v4, %v597_v1  ;;  %v1602_v7 = vpop.f32.mrb[1].mxu0  ;;  %v1684_v9 = vpop.f32.mrb[17].mxu1 }
 0x247   :  { %v2132_v10 = vadd.f32 %v1602_v7, %v593_v2  ;;  %v2134_v36 = vadd.f32 %v1684_v9, %v601_v45  ;;  %v1604_v11 = vpop.f32.mrb[2].mxu0  ;;  %v1686_v12 = vpop.f32.mrb[18].mxu1 }
 0x248   :  { %v1851_v13 = vsub.f32 0.0, %v2131_v5  ;;  %v1853_v23 = vsub.f32 0.0, %v2133_v6  ;;  %v1605_v14 = vpop.f32.mrb[3].mxu0  ;;  %v1687_v15 = vpop.f32.mrb[19].mxu1 }
 0x249   :  { %v1852_v16 = vsub.f32 0.0, %v2132_v10  ;;  %v1854_v38 = vsub.f32 0.0, %v2134_v36 }
 0x24a   :  { %v1858_v17 = vmul.f32 1.442695, %v1851_v13  ;;  %v1862_v18 = vmul.f32 1.442695, %v1853_v23 }
 0x24b   :  { %v1860_v19 = vmul.f32 1.442695, %v1852_v16  ;;  %v1864_v49 = vmul.f32 1.442695, %v1854_v38 }
 0x24c   :  { %2426 = vpow2.f32 %v1858_v17 }
 0x24d   :  { %2428 = vpow2.f32 %v1862_v18 }
 0x24e   :  { %2430 = vpow2.f32 %v1860_v19 }
 0x24f   :  { %2432 = vpow2.f32 %v1864_v49 }
 0x256   :  { %v2427_v20 = vpop.eup %2426 }
 0x257   :  { %v2429_v21 = vpop.eup %2428  ;;  %v1872_v22 = vadd.f32 1.0, %v2427_v20 }
 0x258   :  { %v2431_v24 = vpop.eup %2430  ;;  %v1874_v25 = vadd.f32 1.0, %v2429_v21 }
 0x259   :  { %v2433_v26 = vpop.eup %2432  ;;  %2434 = vrcp.f32 %v1872_v22  ;;  %v1873_v27 = vadd.f32 1.0, %v2431_v24 }
 0x25a   :  { %2436 = vrcp.f32 %v1874_v25  ;;  %v1875_v28 = vadd.f32 1.0, %v2433_v26 }
 0x25b   :  { %2438 = vrcp.f32 %v1873_v27 }
 0x25c   :  { %2440 = vrcp.f32 %v1875_v28 }
 0x263   :  { %v2435_v29 = vpop.eup %2434 }
 0x264   :  { %v2437_v30 = vpop.eup %2436  ;;  %1886 = vst [vmem:[#allocation11] sm:$0xff] %v2435_v29 }
 0x265   :  { %v2439_v32 = vpop.eup %2438  ;;  %1888 = vst [vmem:[#allocation11 + $0x10] sm:$0xff] %v2437_v30 }
 0x266   :  { %v2441_v33 = vpop.eup %2440  ;;  %1887 = vst [vmem:[#allocation11 + $0x8] sm:$0xff] %v2439_v32  ;;  %v2125_v34 = vpop.f32.mrb[20].mxu1 }
 0x267   :  { %1889 = vst [vmem:[#allocation11 + $0x18] sm:$0xff] %v2441_v33  ;;  %v2126_v35 = vpop.f32.mrb[21].mxu1 }
 0x268   :  { %v2127_v39 = vadd.f32 %v2126_v35, %v2125_v34  ;;  %v2128_v40 = vpop.f32.mrb[22].mxu1 }
 0x269   :  { %v2129_v41 = vpop.f32.mrb[23].mxu1 }
 0x26a   :  { %v1806_v43 = vadd.f32 %v2127_v39, %v613_v37 }
 0x28a   :  { %v1845_v44 = vpop.f32.mrb[24].mxu1 }
 0x28b   :  { %v1846_v46 = vadd.f32 %v1845_v44, %v1806_v43  ;;  %v1847_v47 = vpop.f32.mrb[25].mxu1 }
 0x28c   :  { %v1848_v48 = vpop.f32.mrb[26].mxu1 }
 0x28d   :  { %v1857_v50 = vsub.f32 0.0, %v1846_v46  ;;  %v1849_v51 = vpop.f32.mrb[27].mxu1 }
 0x28f   :  { %v1870_v53 = vmul.f32 1.442695, %v1857_v50 }
 0x291   :  { %2442 = vpow2.f32 %v1870_v53 }
 0x29b   :  { %v2443_v54 = vpop.eup %2442 }
 0x29c   :  { %v1878_v0 = vadd.f32 1.0, %v2443_v54 }
 0x29e   :  { %2444 = vrcp.f32 %v1878_v0 }
 0x2a8   :  { %v2445_v58 = vpop.eup %2444 }
 0x2a9   :  { %1892 = vst [vmem:[#allocation11 + $0x30] sm:$0xff] %v2445_v58  ;;  %v1764_v59 = vpop.f32.mrb[4].mxu0 }
 0x2aa   :  { %v2135_v60 = vadd.f32 %v1764_v59, %v605_v8  ;;  %v1766_v61 = vpop.f32.mrb[5].mxu0 }
 0x2ab   :  { %v2136_v62 = vadd.f32 %v1766_v61, %v609_v56  ;;  %v1768_v63 = vpop.f32.mrb[6].mxu0 }
 0x2ac   :  { %v1855_v1 = vsub.f32 0.0, %v2135_v60  ;;  %v1769_v2 = vpop.f32.mrb[7].mxu0 }
 0x2ad   :  { %v1856_v45 = vsub.f32 0.0, %v2136_v62 }
 0x2ae   :  { %v1866_v3 = vmul.f32 1.442695, %v1855_v1 }
 0x2af   :  { %v1868_v4 = vmul.f32 1.442695, %v1856_v45 }
 0x2b0   :  { %2446 = vpow2.f32 %v1866_v3 }
 0x2b1   :  { %2448 = vpow2.f32 %v1868_v4 }
 0x2ba   :  { %v2447_v5 = vpop.eup %2446 }
 0x2bb   :  { %v2449_v31 = vpop.eup %2448  ;;  %v1876_v6 = vadd.f32 1.0, %v2447_v5 }
 0x2bc   :  { %v1877_v7 = vadd.f32 1.0, %v2449_v31 }
 0x2bd   :  { %2450 = vrcp.f32 %v1876_v6 }
 0x2be   :  { %2452 = vrcp.f32 %v1877_v7 }
 0x2c7   :  { %v2451_v52 = vpop.eup %2450 }
 0x2c8   :  { %v2453_v9 = vpop.eup %2452  ;;  %1890 = vst [vmem:[#allocation11 + $0x20] sm:$0xff] %v2451_v52 }
 0x2c9   :  { %1891 = vst [vmem:[#allocation11 + $0x28] sm:$0xff] %v2453_v9 }
 0x2ca   :  { %2575 = shalt.err (!%p2572_p2)
}
 0x2cb   :  { %s2576_s20 = scalar_lea.hbm %s2828_s7, 896 }
 0x2cc   :  { %p2577_p3 = scmp.ne.s32.totalorder %s2828_s7, %s2576_s20  ;;  %p2580_p4 = scmp.lt.u32.totalorder %s2576_s20, %s2828_s7 }
 0x2ce   :  { %p2582_p5 = pnand %p2580_p4, %p2577_p3 }
 0x2d0   :  { %2585 = shalt.err (!%p2582_p5)
}
 0x2d1   :  { %1902 = dma.vmem_to_hbm [thread:$0]  %s1900_s15, 896, %s2828_s7, [#allocation4]  }
 0x2d2   :  { %2592 = dma.done.wait [#allocation4], 896  }
 0x2d3   :  { %2593 = vsyncadd [#allocation4], 4294966400 }
 0x2d4   :  { %1906 = vsyncpa [#allocation3], 1 }
 0x2d5   :  { %1907 = vsyncpa [#allocation6], 1 }
 0x2d6   :  { %1908 = vsyncpa [#allocation9], 1 }
 0x2d7   :  { %1909 = vsyncpa [#allocation4], 1 }

</bundles_post_ra>
